<compile_context>
chip_gen: v6e
topology: v6e:2x2x1
jax: 0.10.0
libtpu: 0.0.40
codegen_flags: <defaults>
</compile_context>

<pallas_src>
import functools

import jax
import jax.numpy as jnp
from jax.experimental import pallas as pl
from jax.experimental.pallas import tpu as pltpu


def _round_up(n, m):
    return ((n + m - 1) // m) * m


def _elu(x):
    # ELU(alpha=1): x for x > 0 else exp(x) - 1.  exp runs on the EUP slot;
    # in bf16 mode the whole thing stays bf16 (bf16 EUP on v6e/v7x).
    return jnp.where(x > 0, x, jnp.exp(jnp.minimum(x, 0.0)) - 1.0)


def _cvae_kernel(in_ref, w_ed_ref, w_out_ref, b_out_ref, out_ref,
                 *, seq4, class_size, latent, dec_w):
    f32 = jnp.float32
    cdt = w_ed_ref.dtype                          # MXU operand dtype (f32/bf16)
    tb, in_w = in_ref.shape
    hid_p = w_ed_ref.shape[1]                     # hidden 400 padded -> 512
    out_w = out_ref.shape[1]

    slab = in_ref[...]                            # [TB,in_w]: x | c | eps | 0 | 1
    w1 = w_ed_ref[0:in_w, :]                      # [in_w,hid_p], last row = b1
    w3 = w_ed_ref[in_w:in_w + dec_w, :]           # [dec_w,hid_p], last row = b3
    w_head = w_out_ref[0:hid_p, :]                # [hid_p,*]  (mu|logvar cols)
    w4 = w_out_ref[hid_p:2 * hid_p, :]            # [hid_p,*]  (recon cols)
    b_all = b_out_ref[...].astype(f32)            # [1, 2*latent + seq4]

    # ---- encode: one K=in_w MXU pass (x, c and b1 folded into W1) ----------
    h1 = _elu(jnp.dot(slab, w1, preferred_element_type=f32).astype(cdt))

    head = jnp.dot(h1, w_head, preferred_element_type=f32)
    mu_logvar = head[:, :2 * latent] + b_all[:, :2 * latent]
    mu = mu_logvar[:, :latent]
    logvar = mu_logvar[:, latent:]

    # ---- reparameterize (eps arrives as lanes of the input slab) -----------
    eps = slab[:, seq4 + class_size:seq4 + class_size + latent].astype(f32)
    z = mu + eps * jnp.exp(0.5 * logvar)

    # ---- decode: build z | c | 0 | 1 in registers -> one K=dec_w MXU pass --
    c = slab[:, seq4:seq4 + class_size].astype(f32)
    zc = jnp.concatenate(
        [z, c,
         jnp.zeros((tb, dec_w - latent - class_size - 1), f32),
         jnp.ones((tb, 1), f32)], axis=1).astype(cdt)        # [TB, dec_w]
    h3 = _elu(jnp.dot(zc, w3, preferred_element_type=f32).astype(cdt))

    logits = (jnp.dot(h3, w4, preferred_element_type=f32)[:, :seq4]
              + b_all[:, 2 * latent:])
    # sigmoid via EUP exp + approximate EUP reciprocal (no VPU divide)
    recon = pl.reciprocal(1.0 + jnp.exp(-logits), approx=True)

    # ---- single lane-dense full-width store ---------------------------------
    out_ref[...] = jnp.concatenate(
        [recon, mu_logvar,
         jnp.zeros((tb, out_w - seq4 - 2 * latent), f32)], axis=1)


def _pick_tiles(B):
    """Batch tile (multiple of 8, <=1024) and padded batch; even #steps for v7x."""
    b8 = _round_up(max(B, 1), 8)
    if b8 <= 512:
        n_steps = 1                       # tiny batch: one step, no split overhead
    else:
        n_steps = pl.cdiv(b8, 1024)
        if n_steps < 2:
            n_steps = 2                   # give v7x's second TensorCore work
        if n_steps % 2:
            n_steps += 1                  # balance across 2 cores
    tb = _round_up(pl.cdiv(b8, n_steps), 8)
    return tb, n_steps * tb


def _vmem_limit_bytes(tb, in_itemsize):
    est = (2 * tb * 128 * in_itemsize     # input slab (double-buffered)
           + 2 * tb * 128 * 4             # output slab (double-buffered, f32)
           + 6 * tb * 512 * 4             # h1/h3/zc + elementwise temporaries
           + (4 << 20))                   # weights + headroom
    return int(min(max(2 * est, 32 << 20), 48 << 20))


def cvae_forward(x, c, eps, packed):
    """x: [B, seq4], c: [B, class], eps: [B, latent]; packed = pack_params(...)."""
    B, seq4 = x.shape
    class_size = c.shape[1]
    latent = eps.shape[1]
    cdt = packed["w_ed"].dtype
    in_w = _round_up(seq4 + class_size + latent + 1, 128)
    dec_w = _round_up(latent + class_size + 1, 128)
    out_w = _round_up(seq4 + 2 * latent, 128)

    tb, b_pad = _pick_tiles(B)

    # One lane-dense activation slab: x | c | eps | zeros | 1 (bias lane).
    slab = jnp.concatenate(
        [x, c, eps,
         jnp.zeros((B, in_w - seq4 - class_size - latent - 1), jnp.float32),
         jnp.ones((B, 1), jnp.float32)], axis=1).astype(cdt)
    if b_pad != B:
        slab = jnp.pad(slab, ((0, b_pad - B), (0, 0)))

    kernel = functools.partial(_cvae_kernel, seq4=seq4, class_size=class_size,
                               latent=latent, dec_w=dec_w)

    # TODO(synk): pipeline_mode=pl.Buffered(1) on the resident weight specs
    # would halve their (tiny) VMEM footprint on v7x.
    def resident(arr):
        return pl.BlockSpec(arr.shape, lambda i: (0, 0))

    out = pl.pallas_call(
        kernel,
        out_shape=jax.ShapeDtypeStruct((b_pad, out_w), jnp.float32),
        grid=(b_pad // tb,),
        in_specs=[
            pl.BlockSpec((tb, in_w), lambda i: (i, 0)),
            resident(packed["w_ed"]),
            resident(packed["w_out"]),
            resident(packed["b_out"]),
        ],
        out_specs=pl.BlockSpec((tb, out_w), lambda i: (i, 0)),
        compiler_params=pltpu.CompilerParams(
            dimension_semantics=("parallel",),   # shard batch tiles across TCs
            vmem_limit_bytes=_vmem_limit_bytes(tb, jnp.dtype(cdt).itemsize),
        ),
    )(slab, packed["w_ed"], packed["w_out"], packed["b_out"])

    recon = out[:B, :seq4]
    mu = out[:B, seq4:seq4 + latent]
    logvar = out[:B, seq4 + latent:seq4 + 2 * latent]
    return recon, mu, logvar


def init_params(seq_length, latent_size, class_size, key):
    """Raw params in [in, out] layout (transpose of nn.Linear's [out, in])."""
    seq4 = seq_length * 4
    keys = jax.random.split(key, 10)
    scale = 0.05

    def w(k, shape):
        return (scale * jax.random.normal(k, shape)).astype(jnp.float32)

    return {
        "w1": w(keys[0], (seq4 + class_size, 400)), "b1": w(keys[1], (400,)),
        "w21": w(keys[2], (400, latent_size)),      "b21": w(keys[3], (latent_size,)),
        "w22": w(keys[4], (400, latent_size)),      "b22": w(keys[5], (latent_size,)),
        "w3": w(keys[6], (latent_size + class_size, 400)), "b3": w(keys[7], (400,)),
        "w4": w(keys[8], (400, seq4)),              "b4": w(keys[9], (seq4,)),
    }


def pack_params(params, seq_length, latent_size, class_size, dtype=jnp.float32):
    """Pad hidden 400->512, fold b1/b3 into bias rows, stack into 3 operands."""
    f32 = jnp.float32
    seq4 = seq_length * 4
    hid = params["w1"].shape[1]                     # 400
    hid_p = _round_up(hid, 128)                     # 512 (lane-dense hidden)
    in_w = _round_up(seq4 + class_size + latent_size + 1, 128)
    dec_w = _round_up(latent_size + class_size + 1, 128)
    out_col = max(2 * latent_size, seq4)

    # Encoder: rows 0:seq4+class = W1 (x|c rows), last row = b1; eps rows = 0.
    w1_full = jnp.zeros((in_w, hid_p), f32)
    w1_full = w1_full.at[:seq4 + class_size, :hid].set(params["w1"])
    w1_full = w1_full.at[in_w - 1, :hid].set(params["b1"])

    # Decoder: rows 0:latent+class = W3 (z|c rows), last row = b3.
    w3_full = jnp.zeros((dec_w, hid_p), f32)
    w3_full = w3_full.at[:latent_size + class_size, :hid].set(params["w3"])
    w3_full = w3_full.at[dec_w - 1, :hid].set(params["b3"])

    # Head (fc21|fc22 fused) and fc4, row-stacked into a single operand.
    w_head = jnp.zeros((hid_p, out_col), f32)
    w_head = w_head.at[:hid, :2 * latent_size].set(
        jnp.concatenate([params["w21"], params["w22"]], axis=1))
    w4 = jnp.zeros((hid_p, out_col), f32)
    w4 = w4.at[:hid, :seq4].set(params["w4"])

    return {
        "w_ed": jnp.concatenate([w1_full, w3_full], axis=0).astype(dtype),
        "w_out": jnp.concatenate([w_head, w4], axis=0).astype(dtype),
        "b_out": jnp.concatenate([params["b21"], params["b22"],
                                  params["b4"]])[None, :].astype(f32),
    }


def reference_forward(x, c, params, eps):
    """Pure-JAX reference of the PyTorch forward."""
    xc = jnp.concatenate([x, c], axis=1)
    h1 = jax.nn.elu(xc @ params["w1"] + params["b1"])
    mu = h1 @ params["w21"] + params["b21"]
    logvar = h1 @ params["w22"] + params["b22"]
    z = mu + eps * jnp.exp(0.5 * logvar)
    zc = jnp.concatenate([z, c], axis=1)
    h3 = jax.nn.elu(zc @ params["w3"] + params["b3"])
    recon = jax.nn.sigmoid(h3 @ params["w4"] + params["b4"])
    return recon, mu, logvar


if __name__ == "__main__":
    # seq_length=8 -> module seq_length=32; latent=16, class=4, batch=2
    seq_length, latent_size, class_size, batch = 8, 16, 4, 2
    seq4 = seq_length * 4

    key = jax.random.PRNGKey(0)
    k_x, k_c, k_eps, k_p = jax.random.split(key, 4)

    x = jax.random.uniform(k_x, (batch, seq4), dtype=jnp.float32)
    c_idx = jax.random.randint(k_c, (batch,), 0, class_size)
    c = jax.nn.one_hot(c_idx, class_size, dtype=jnp.float32)
    # TODO(synk): torch.randn_like in reparameterize is replaced by a
    # deterministic host-supplied eps (could move to pltpu.prng_* in-kernel).
    eps = jax.random.normal(k_eps, (batch, latent_size), dtype=jnp.float32)

    params = init_params(seq_length, latent_size, class_size, k_p)
    r_ref, mu_ref, lv_ref = reference_forward(x, c, params, eps)

    # f32 MXU-operand path (exactness check vs. the pure-JAX reference).
    packed_f32 = pack_params(params, seq_length, latent_size, class_size,
                             dtype=jnp.float32)
    recon, mu, logvar = cvae_forward(x, c, eps, packed_f32)
    jax.block_until_ready((recon, mu, logvar))
    assert jnp.allclose(mu, mu_ref, atol=1e-4), "mu mismatch (f32)"
    assert jnp.allclose(logvar, lv_ref, atol=1e-4), "logvar mismatch (f32)"
    assert jnp.allclose(recon, r_ref, atol=3e-3), "recon mismatch (f32)"

    # bf16 MXU-operand path (fast path on v6e/v7x; f32 accumulation).
    packed_bf16 = pack_params(params, seq_length, latent_size, class_size,
                              dtype=jnp.bfloat16)
    recon_b, mu_b, logvar_b = cvae_forward(x, c, eps, packed_bf16)
    jax.block_until_ready((recon_b, mu_b, logvar_b))
    assert jnp.allclose(mu_b, mu_ref, atol=3e-2), "mu mismatch (bf16)"
    assert jnp.allclose(logvar_b, lv_ref, atol=3e-2), "logvar mismatch (bf16)"
    assert jnp.allclose(recon_b, r_ref, atol=3e-2), "recon mismatch (bf16)"

    print("KERNEL_OK")
</pallas_src>

<mosaic_0001>
module attributes {stable_mosaic.version = 11 : i64} {
  func.func @_cvae_kernel(%arg0: i32, %arg1: memref<8x128xf32, #tpu.memory_space<vmem>>, %arg2: memref<256x512xf32, #tpu.memory_space<vmem>>, %arg3: memref<1024x32xf32, #tpu.memory_space<vmem>>, %arg4: memref<1x64xf32, #tpu.memory_space<vmem>>, %arg5: memref<8x128xf32, #tpu.memory_space<vmem>>) attributes {dimension_semantics = [#tpu.dimension_semantics<parallel>], iteration_bounds = array<i64: 1>, scalar_prefetch = 0 : i64, scratch_operands = 0 : i64, tpu.core_type = #tpu.core_type<tc>, window_params = [{transform_indices = @transform_0, window_bounds = array<i64: 8, 128>}, {pipeline_mode = #tpu.pipeline_mode<synchronous>, transform_indices = @transform_1, window_bounds = array<i64: 256, 512>}, {pipeline_mode = #tpu.pipeline_mode<synchronous>, transform_indices = @transform_2, window_bounds = array<i64: 1024, 32>}, {pipeline_mode = #tpu.pipeline_mode<synchronous>, transform_indices = @transform_3, window_bounds = array<i64: 1, 64>}, {transform_indices = @transform_4, window_bounds = array<i64: 8, 128>}]} {
    %c0 = arith.constant 0 : index
    %c0_0 = arith.constant 0 : index
    %0 = vector.load %arg1[%c0, %c0_0] : memref<8x128xf32, #tpu.memory_space<vmem>>, vector<8x128xf32>
    %c0_1 = arith.constant 0 : index
    %c0_2 = arith.constant 0 : index
    %1 = vector.load %arg2[%c0_1, %c0_2] : memref<256x512xf32, #tpu.memory_space<vmem>>, vector<128x512xf32>
    %c128 = arith.constant 128 : index
    %c0_3 = arith.constant 0 : index
    %2 = vector.load %arg2[%c128, %c0_3] : memref<256x512xf32, #tpu.memory_space<vmem>>, vector<128x512xf32>
    %c0_4 = arith.constant 0 : index
    %c0_5 = arith.constant 0 : index
    %3 = vector.load %arg3[%c0_4, %c0_5] : memref<1024x32xf32, #tpu.memory_space<vmem>>, vector<512x32xf32>
    %c512 = arith.constant 512 : index
    %c0_6 = arith.constant 0 : index
    %4 = vector.load %arg3[%c512, %c0_6] : memref<1024x32xf32, #tpu.memory_space<vmem>>, vector<512x32xf32>
    %c0_7 = arith.constant 0 : index
    %c0_8 = arith.constant 0 : index
    %5 = vector.load %arg4[%c0_7, %c0_8] : memref<1x64xf32, #tpu.memory_space<vmem>>, vector<1x64xf32>
    %cst = arith.constant dense<0.000000e+00> : vector<8x512xf32>
    %6 = tpu.matmul %0, %1, %cst {dimension_numbers = #tpu.dot_dimension_numbers<[1], [0], [0], [1], [0, 0, 1, 1], [], []>} : vector<8x128xf32>, vector<128x512xf32>, vector<8x512xf32> -> vector<8x512xf32>
    %cst_9 = arith.constant 0.000000e+00 : f32
    %7 = vector.broadcast %cst_9 : f32 to vector<8x512xf32>
    %8 = arith.cmpf ogt, %6, %7 : vector<8x512xf32>
    %cst_10 = arith.constant 0.000000e+00 : f32
    %9 = vector.broadcast %cst_10 : f32 to vector<8x512xf32>
    %10 = arith.minimumf %6, %9 : vector<8x512xf32>
    %11 = math.exp %10 : vector<8x512xf32>
    %cst_11 = arith.constant 1.000000e+00 : f32
    %12 = vector.broadcast %cst_11 : f32 to vector<8x512xf32>
    %13 = arith.subf %11, %12 : vector<8x512xf32>
    %14 = arith.select %8, %6, %13 : vector<8x512xi1>, vector<8x512xf32>
    %cst_12 = arith.constant dense<0.000000e+00> : vector<8x32xf32>
    %15 = tpu.matmul %14, %3, %cst_12 {dimension_numbers = #tpu.dot_dimension_numbers<[1], [0], [0], [1], [0, 0, 1, 1], [], []>} : vector<8x512xf32>, vector<512x32xf32>, vector<8x32xf32> -> vector<8x32xf32>
    %16 = vector.extract_strided_slice %5 {offsets = [0, 0], sizes = [1, 32], strides = [1, 1]} : vector<1x64xf32> to vector<1x32xf32>
    %17 = vector.broadcast %16 : vector<1x32xf32> to vector<8x32xf32>
    %18 = arith.addf %15, %17 : vector<8x32xf32>
    %19 = vector.extract_strided_slice %18 {offsets = [0, 0], sizes = [8, 16], strides = [1, 1]} : vector<8x32xf32> to vector<8x16xf32>
    %20 = vector.extract_strided_slice %18 {offsets = [0, 16], sizes = [8, 16], strides = [1, 1]} : vector<8x32xf32> to vector<8x16xf32>
    %21 = vector.extract_strided_slice %0 {offsets = [0, 36], sizes = [8, 16], strides = [1, 1]} : vector<8x128xf32> to vector<8x16xf32>
    %cst_13 = arith.constant 5.000000e-01 : f32
    %22 = vector.broadcast %cst_13 : f32 to vector<8x16xf32>
    %23 = arith.mulf %22, %20 : vector<8x16xf32>
    %24 = math.exp %23 : vector<8x16xf32>
    %25 = arith.mulf %21, %24 : vector<8x16xf32>
    %26 = arith.addf %19, %25 : vector<8x16xf32>
    %27 = vector.extract_strided_slice %0 {offsets = [0, 32], sizes = [8, 4], strides = [1, 1]} : vector<8x128xf32> to vector<8x4xf32>
    %cst_14 = arith.constant 0.000000e+00 : f32
    %28 = vector.broadcast %cst_14 : f32 to vector<8x107xf32>
    %cst_15 = arith.constant 1.000000e+00 : f32
    %29 = vector.broadcast %cst_15 : f32 to vector<8x1xf32>
    %30 = tpu.concatenate %26, %27, %28, %29 in 1 : vector<8x16xf32>, vector<8x4xf32>, vector<8x107xf32>, vector<8x1xf32> -> vector<8x128xf32>
    %cst_16 = arith.constant dense<0.000000e+00> : vector<8x512xf32>
    %31 = tpu.matmul %30, %2, %cst_16 {dimension_numbers = #tpu.dot_dimension_numbers<[1], [0], [0], [1], [0, 0, 1, 1], [], []>} : vector<8x128xf32>, vector<128x512xf32>, vector<8x512xf32> -> vector<8x512xf32>
    %cst_17 = arith.constant 0.000000e+00 : f32
    %32 = vector.broadcast %cst_17 : f32 to vector<8x512xf32>
    %33 = arith.cmpf ogt, %31, %32 : vector<8x512xf32>
    %cst_18 = arith.constant 0.000000e+00 : f32
    %34 = vector.broadcast %cst_18 : f32 to vector<8x512xf32>
    %35 = arith.minimumf %31, %34 : vector<8x512xf32>
    %36 = math.exp %35 : vector<8x512xf32>
    %cst_19 = arith.constant 1.000000e+00 : f32
    %37 = vector.broadcast %cst_19 : f32 to vector<8x512xf32>
    %38 = arith.subf %36, %37 : vector<8x512xf32>
    %39 = arith.select %33, %31, %38 : vector<8x512xi1>, vector<8x512xf32>
    %cst_20 = arith.constant dense<0.000000e+00> : vector<8x32xf32>
    %40 = tpu.matmul %39, %4, %cst_20 {dimension_numbers = #tpu.dot_dimension_numbers<[1], [0], [0], [1], [0, 0, 1, 1], [], []>} : vector<8x512xf32>, vector<512x32xf32>, vector<8x32xf32> -> vector<8x32xf32>
    %41 = vector.extract_strided_slice %5 {offsets = [0, 32], sizes = [1, 32], strides = [1, 1]} : vector<1x64xf32> to vector<1x32xf32>
    %42 = vector.broadcast %41 : vector<1x32xf32> to vector<8x32xf32>
    %43 = arith.addf %40, %42 : vector<8x32xf32>
    %cst_21 = arith.constant 0.000000e+00 : f32
    %44 = vector.broadcast %cst_21 : f32 to vector<8x32xf32>
    %45 = arith.subf %44, %43 : vector<8x32xf32>
    %46 = math.exp %45 : vector<8x32xf32>
    %cst_22 = arith.constant 1.000000e+00 : f32
    %47 = vector.broadcast %cst_22 : f32 to vector<8x32xf32>
    %48 = arith.addf %47, %46 : vector<8x32xf32>
    %49 = tpu.reciprocal %48 {approx = true} : vector<8x32xf32> -> vector<8x32xf32>
    %cst_23 = arith.constant 0.000000e+00 : f32
    %50 = vector.broadcast %cst_23 : f32 to vector<8x64xf32>
    %51 = tpu.concatenate %49, %18, %50 in 1 : vector<8x32xf32>, vector<8x32xf32>, vector<8x64xf32> -> vector<8x128xf32>
    %c0_24 = arith.constant 0 : index
    %c0_25 = arith.constant 0 : index
    %52 = vector.load %arg5[%c0_24, %c0_25] : memref<8x128xf32, #tpu.memory_space<vmem>>, vector<8x128xf32>
    tpu.vector_store %arg5[%c0_24, %c0_25], %51 {strides = array<i32>} : memref<8x128xf32, #tpu.memory_space<vmem>>, vector<8x128xf32>,
    return
  }
  func.func @transform_0(%arg0: i32) -> (i32, i32) {
    %c0_i32 = arith.constant 0 : i32
    %c0_i32_0 = arith.constant 0 : i32
    return %arg0, %c0_i32 : i32, i32
  }
  func.func @transform_1(%arg0: i32) -> (i32, i32) {
    %c0_i32 = arith.constant 0 : i32
    %c0_i32_0 = arith.constant 0 : i32
    %c0_i32_1 = arith.constant 0 : i32
    return %c0_i32, %c0_i32_0 : i32, i32
  }
  func.func @transform_2(%arg0: i32) -> (i32, i32) {
    %c0_i32 = arith.constant 0 : i32
    %c0_i32_0 = arith.constant 0 : i32
    %c0_i32_1 = arith.constant 0 : i32
    return %c0_i32, %c0_i32_0 : i32, i32
  }
  func.func @transform_3(%arg0: i32) -> (i32, i32) {
    %c0_i32 = arith.constant 0 : i32
    %c0_i32_0 = arith.constant 0 : i32
    %c0_i32_1 = arith.constant 0 : i32
    return %c0_i32, %c0_i32_0 : i32, i32
  }
  func.func @transform_4(%arg0: i32) -> (i32, i32) {
    %c0_i32 = arith.constant 0 : i32
    %c0_i32_0 = arith.constant 0 : i32
    return %arg0, %c0_i32 : i32, i32
  }
}

</mosaic_0001>

<bundles_post_ra>
// kernel: tpu_custom_call.1
= control target key start
LH: loop header
LB: loop body
LE: loop exit
PB: predicated region body
PF: predicated region fallthrough
CT: control target
= control target key end

     0   :  { %s1976_s0 = inlined_call_operand.vmem [shape: f32[8,128], index: 0, kind: input, shape index: {}]   ;;  %s1977_s1 = inlined_call_operand.vmem [shape: f32[256,512], index: 1, kind: input, shape index: {}]   ;;  %s1978_s2 = inlined_call_operand.vmem [shape: f32[1024,32], index: 2, kind: input, shape index: {}]   ;;  %s1979_s3 = inlined_call_operand.vmem [shape: f32[1,64], index: 3, kind: input, shape index: {}]   ;;  %s1980_s4 = inlined_call_operand.hbm [shape: f32[8,128], index: 4, kind: output, shape index: {}]  }
   0x1   :  { %v80_v0 = vld [vmem:[%s1977_s1 + $0x1e8] sm:$0xff]  ;;  %v82_v1 = vld [vmem:[%s1977_s1 + $0x1f8] sm:$0xff]  ;;  %v79_v2 = vld [vmem:[%s1977_s1 + $0x1e0] sm:$0xff] }
   0x2   :  { %276 = vmatprep.subr.mxu0 %v80_v0  ;;  %347 = vmatprep.subr.mxu1 %v82_v1  ;;  %v81_v3 = vld [vmem:[%s1977_s1 + $0x1f0] sm:$0xff]  ;;  %v76_v4 = vld [vmem:[%s1977_s1 + $0x1c8] sm:$0xff]  ;;  %v78_v5 = vld [vmem:[%s1977_s1 + $0x1d8] sm:$0xff] }
   0x3   :  { %277 = vmatpush1.msra.mxu0 %v79_v2  ;;  %348 = vmatpush1.msra.mxu1 %v81_v3  ;;  %v75_v6 = vld [vmem:[%s1977_s1 + $0x1c0] sm:$0xff]  ;;  %v77_v7 = vld [vmem:[%s1977_s1 + $0x1d0] sm:$0xff]  ;;  %v72_v8 = vld [vmem:[%s1977_s1 + $0x1a8] sm:$0xff] }
   0x4   :  { %278 = vmatprep.subr.mxu0 %v76_v4  ;;  %349 = vmatprep.subr.mxu1 %v78_v5  ;;  %v74_v9 = vld [vmem:[%s1977_s1 + $0x1b8] sm:$0xff]  ;;  %v71_v10 = vld [vmem:[%s1977_s1 + $0x1a0] sm:$0xff]  ;;  %v73_v11 = vld [vmem:[%s1977_s1 + $0x1b0] sm:$0xff] }
   0x5   :  { %279 = vmatpush1.msra.mxu0 %v75_v6  ;;  %350 = vmatpush1.msra.mxu1 %v77_v7  ;;  %v68_v12 = vld [vmem:[%s1977_s1 + $0x188] sm:$0xff]  ;;  %v70_v13 = vld [vmem:[%s1977_s1 + $0x198] sm:$0xff]  ;;  %v67_v14 = vld [vmem:[%s1977_s1 + $0x180] sm:$0xff] }
   0x6   :  { %280 = vmatprep.subr.mxu0 %v72_v8  ;;  %351 = vmatprep.subr.mxu1 %v74_v9  ;;  %v69_v15 = vld [vmem:[%s1977_s1 + $0x190] sm:$0xff]  ;;  %v64_v16 = vld [vmem:[%s1977_s1 + $0x168] sm:$0xff]  ;;  %v66_v17 = vld [vmem:[%s1977_s1 + $0x178] sm:$0xff] }
   0x7   :  { %281 = vmatpush1.msra.mxu0 %v71_v10  ;;  %352 = vmatpush1.msra.mxu1 %v73_v11  ;;  %v63_v18 = vld [vmem:[%s1977_s1 + $0x160] sm:$0xff]  ;;  %v65_v19 = vld [vmem:[%s1977_s1 + $0x170] sm:$0xff]  ;;  %v60_v20 = vld [vmem:[%s1977_s1 + $0x148] sm:$0xff] }
   0x8   :  { %282 = vmatprep.subr.mxu0 %v68_v12  ;;  %353 = vmatprep.subr.mxu1 %v70_v13  ;;  %v62_v21 = vld [vmem:[%s1977_s1 + $0x158] sm:$0xff]  ;;  %v59_v22 = vld [vmem:[%s1977_s1 + $0x140] sm:$0xff]  ;;  %v61_v23 = vld [vmem:[%s1977_s1 + $0x150] sm:$0xff] }
   0x9   :  { %283 = vmatpush1.msra.mxu0 %v67_v14  ;;  %354 = vmatpush1.msra.mxu1 %v69_v15  ;;  %v56_v24 = vld [vmem:[%s1977_s1 + $0x128] sm:$0xff]  ;;  %v58_v25 = vld [vmem:[%s1977_s1 + $0x138] sm:$0xff]  ;;  %v55_v26 = vld [vmem:[%s1977_s1 + $0x120] sm:$0xff] }
   0xa   :  { %284 = vmatprep.subr.mxu0 %v64_v16  ;;  %355 = vmatprep.subr.mxu1 %v66_v17  ;;  %v57_v27 = vld [vmem:[%s1977_s1 + $0x130] sm:$0xff]  ;;  %v52_v28 = vld [vmem:[%s1977_s1 + $0x108] sm:$0xff]  ;;  %v54_v29 = vld [vmem:[%s1977_s1 + $0x118] sm:$0xff] }
   0xb   :  { %285 = vmatpush1.msra.mxu0 %v63_v18  ;;  %356 = vmatpush1.msra.mxu1 %v65_v19  ;;  %v51_v30 = vld [vmem:[%s1977_s1 + $0x100] sm:$0xff]  ;;  %v53_v31 = vld [vmem:[%s1977_s1 + $0x110] sm:$0xff]  ;;  %v48_v32 = vld [vmem:[%s1977_s1 + $0xe8] sm:$0xff] }
   0xc   :  { %286 = vmatprep.subr.mxu0 %v60_v20  ;;  %357 = vmatprep.subr.mxu1 %v62_v21  ;;  %v50_v33 = vld [vmem:[%s1977_s1 + $0xf8] sm:$0xff]  ;;  %v47_v34 = vld [vmem:[%s1977_s1 + $0xe0] sm:$0xff]  ;;  %v49_v35 = vld [vmem:[%s1977_s1 + $0xf0] sm:$0xff] }
   0xd   :  { %287 = vmatpush1.msra.mxu0 %v59_v22  ;;  %358 = vmatpush1.msra.mxu1 %v61_v23  ;;  %v44_v36 = vld [vmem:[%s1977_s1 + $0xc8] sm:$0xff]  ;;  %v46_v37 = vld [vmem:[%s1977_s1 + $0xd8] sm:$0xff]  ;;  %v43_v38 = vld [vmem:[%s1977_s1 + $0xc0] sm:$0xff] }
   0xe   :  { %288 = vmatprep.subr.mxu0 %v56_v24  ;;  %359 = vmatprep.subr.mxu1 %v58_v25  ;;  %v45_v39 = vld [vmem:[%s1977_s1 + $0xd0] sm:$0xff]  ;;  %v40_v40 = vld [vmem:[%s1977_s1 + $0xa8] sm:$0xff]  ;;  %v42_v41 = vld [vmem:[%s1977_s1 + $0xb8] sm:$0xff] }
   0xf   :  { %289 = vmatpush1.msra.mxu0 %v55_v26  ;;  %360 = vmatpush1.msra.mxu1 %v57_v27  ;;  %v39_v42 = vld [vmem:[%s1977_s1 + $0xa0] sm:$0xff]  ;;  %v41_v43 = vld [vmem:[%s1977_s1 + $0xb0] sm:$0xff]  ;;  %v36_v44 = vld [vmem:[%s1977_s1 + $0x88] sm:$0xff] }
  0x10   :  { %290 = vmatprep.subr.mxu0 %v52_v28  ;;  %361 = vmatprep.subr.mxu1 %v54_v29  ;;  %v38_v45 = vld [vmem:[%s1977_s1 + $0x98] sm:$0xff]  ;;  %v35_v46 = vld [vmem:[%s1977_s1 + $0x80] sm:$0xff]  ;;  %v37_v47 = vld [vmem:[%s1977_s1 + $0x90] sm:$0xff] }
  0x11   :  { %291 = vmatpush1.msra.mxu0 %v51_v30  ;;  %362 = vmatpush1.msra.mxu1 %v53_v31  ;;  %v32_v48 = vld [vmem:[%s1977_s1 + $0x68] sm:$0xff]  ;;  %v34_v49 = vld [vmem:[%s1977_s1 + $0x78] sm:$0xff]  ;;  %v31_v50 = vld [vmem:[%s1977_s1 + $0x60] sm:$0xff] }
  0x12   :  { %292 = vmatprep.subr.mxu0 %v48_v32  ;;  %363 = vmatprep.subr.mxu1 %v50_v33  ;;  %v33_v51 = vld [vmem:[%s1977_s1 + $0x70] sm:$0xff]  ;;  %v28_v52 = vld [vmem:[%s1977_s1 + $0x48] sm:$0xff]  ;;  %v30_v53 = vld [vmem:[%s1977_s1 + $0x58] sm:$0xff] }
  0x13   :  { %293 = vmatpush1.msra.mxu0 %v47_v34  ;;  %364 = vmatpush1.msra.mxu1 %v49_v35  ;;  %v27_v54 = vld [vmem:[%s1977_s1 + $0x40] sm:$0xff]  ;;  %v29_v55 = vld [vmem:[%s1977_s1 + $0x50] sm:$0xff]  ;;  %v24_v56 = vld [vmem:[%s1977_s1 + $0x28] sm:$0xff] }
  0x14   :  { %294 = vmatprep.subr.mxu0 %v44_v36  ;;  %365 = vmatprep.subr.mxu1 %v46_v37  ;;  %v26_v57 = vld [vmem:[%s1977_s1 + $0x38] sm:$0xff] }
  0x15   :  { %295 = vmatpush1.msra.mxu0 %v43_v38  ;;  %366 = vmatpush1.msra.mxu1 %v45_v39 }
  0x16   :  { %296 = vmatprep.subr.mxu0 %v40_v40  ;;  %367 = vmatprep.subr.mxu1 %v42_v41 }
  0x17   :  { %297 = vmatpush1.msra.mxu0 %v39_v42  ;;  %368 = vmatpush1.msra.mxu1 %v41_v43 }
  0x18   :  { %298 = vmatprep.subr.mxu0 %v36_v44  ;;  %369 = vmatprep.subr.mxu1 %v38_v45 }
  0x19   :  { %299 = vmatpush1.msra.mxu0 %v35_v46  ;;  %370 = vmatpush1.msra.mxu1 %v37_v47 }
  0x1a   :  { %300 = vmatprep.subr.mxu0 %v32_v48  ;;  %371 = vmatprep.subr.mxu1 %v34_v49 }
  0x1b   :  { %301 = vmatpush1.msra.mxu0 %v31_v50  ;;  %372 = vmatpush1.msra.mxu1 %v33_v51 }
  0x1c   :  { %9 = vsyncpa [#allocation3], 0  ;;  %302 = vmatprep.subr.mxu0 %v28_v52  ;;  %373 = vmatprep.subr.mxu1 %v30_v53  ;;  %v23_v58 = vld [vmem:[%s1977_s1 + $0x20] sm:$0xff]  ;;  %v25_v59 = vld [vmem:[%s1977_s1 + $0x30] sm:$0xff]  ;;  %v1148_v1 = vmov 0.0   ;;  %s1149_s10 = smov 112  }
  0x1d   :  { %303 = vmatpush1.msra.mxu0 %v27_v54  ;;  %374 = vmatpush1.msra.mxu1 %v29_v55  ;;  %v20_v60 = vld [vmem:[%s1977_s1 + $0x8] sm:$0xff]  ;;  %v22_v61 = vld [vmem:[%s1977_s1 + $0x18] sm:$0xff]  ;;  %v19_v62 = vld [vmem:[%s1977_s1] sm:$0xff]  ;;  %s1150_s16 = smov 20   ;;  %s1151_s30 = smov 92   ;;  %vm605_vm4 = vcmask 130048  }
  0x1e   :  { %304 = vmatprep.subr.mxu0 %v24_v56  ;;  %375 = vmatprep.subr.mxu1 %v26_v57  ;;  %v21_v63 = vld [vmem:[%s1977_s1 + $0x10] sm:$0xff]  ;;  %v1375_v0 = vld [vmem:[%s1976_s0] sm:$0xff]  ;;  %v178_v2 = vld [vmem:[%s1978_s2 + $0xf8] sm:$0xff]  ;;  %s1152_s5 = smov 32   ;;  %vm607_vm5 = vcmask 162816   ;;  %vm609_vm6 = vcmask 1039360  }
  0x1f   :  { %305 = vmatpush1.msra.mxu0 %v23_v58  ;;  %376 = vmatpush1.msra.mxu1 %v25_v59  ;;  %v210_v3 = vld [vmem:[%s1978_s2 + $0x1f8] sm:$0xff]  ;;  %v177_v6 = vld [vmem:[%s1978_s2 + $0xf0] sm:$0xff]  ;;  %v176_v10 = vld [vmem:[%s1978_s2 + $0xe8] sm:$0xff]  ;;  %vm929_vm11 = vcmask 261120   ;;  %vm931_vm12 = vcmask 523264  }
  0x20   :  { %306 = vmatprep.subr.mxu0 %v20_v60  ;;  %377 = vmatprep.subr.mxu1 %v22_v61  ;;  %v162_v4 = vld [vmem:[%s1978_s2 + $0x78] sm:$0xff]  ;;  %v209_v7 = vld [vmem:[%s1978_s2 + $0x1f0] sm:$0xff]  ;;  %v208_v11 = vld [vmem:[%s1978_s2 + $0x1e8] sm:$0xff] }
  0x21   :  { %307 = vmatpush1.msra.mxu0 %v19_v62  ;;  %340 = vmatprep.mubr.f32.mxu0 %v1148_v1  ;;  %v194_v5 = vld [vmem:[%s1978_s2 + $0x178] sm:$0xff]  ;;  %v161_v8 = vld [vmem:[%s1978_s2 + $0x70] sm:$0xff]  ;;  %v160_v12 = vld [vmem:[%s1978_s2 + $0x68] sm:$0xff] }
  0x22   :  { %378 = vmatpush1.msra.mxu1 %v21_v63  ;;  %411 = vmatprep.mubr.f32.mxu1 %v1148_v1  ;;  %v193_v9 = vld [vmem:[%s1978_s2 + $0x170] sm:$0xff]  ;;  %v192_v13 = vld [vmem:[%s1978_s2 + $0x168] sm:$0xff]  ;;  %v175_v14 = vld [vmem:[%s1978_s2 + $0xe0] sm:$0xff] }
  0x23   :  { %341 = vmatmul.mubr.f32.vlgmr.msra.gmra.mxu0 %v1375_v0  ;;  %412 = vmatmul.mubr.f32.vlgmr.msra.gmra.mxu1 %v1375_v0  ;;  %v207_v15 = vld [vmem:[%s1978_s2 + $0x1e0] sm:$0xff]  ;;  %v174_v18 = vld [vmem:[%s1978_s2 + $0xd8] sm:$0xff]  ;;  %v173_v22 = vld [vmem:[%s1978_s2 + $0xd0] sm:$0xff] }
  0x24   :  { %957 = vmatprep.subr.mxu0 %v178_v2  ;;  %992 = vmatprep.subr.mxu1 %v210_v3  ;;  %v159_v16 = vld [vmem:[%s1978_s2 + $0x60] sm:$0xff]  ;;  %v206_v19 = vld [vmem:[%s1978_s2 + $0x1d8] sm:$0xff]  ;;  %v205_v23 = vld [vmem:[%s1978_s2 + $0x1d0] sm:$0xff] }
  0x25   :  { %958 = vmatpush3.msra.mxu0 %v162_v4  ;;  %993 = vmatpush3.msra.mxu1 %v194_v5  ;;  %v191_v17 = vld [vmem:[%s1978_s2 + $0x160] sm:$0xff]  ;;  %v158_v20 = vld [vmem:[%s1978_s2 + $0x58] sm:$0xff]  ;;  %v157_v24 = vld [vmem:[%s1978_s2 + $0x50] sm:$0xff] }
  0x26   :  { %959 = vmatprep.subr.mxu0 %v177_v6  ;;  %994 = vmatprep.subr.mxu1 %v209_v7  ;;  %v190_v21 = vld [vmem:[%s1978_s2 + $0x158] sm:$0xff]  ;;  %v189_v25 = vld [vmem:[%s1978_s2 + $0x150] sm:$0xff]  ;;  %v172_v26 = vld [vmem:[%s1978_s2 + $0xc8] sm:$0xff] }
  0x27   :  { %960 = vmatpush3.msra.mxu0 %v161_v8  ;;  %995 = vmatpush3.msra.mxu1 %v193_v9  ;;  %v204_v27 = vld [vmem:[%s1978_s2 + $0x1c8] sm:$0xff]  ;;  %v171_v30 = vld [vmem:[%s1978_s2 + $0xc0] sm:$0xff]  ;;  %v170_v34 = vld [vmem:[%s1978_s2 + $0xb8] sm:$0xff] }
  0x28   :  { %961 = vmatprep.subr.mxu0 %v176_v10  ;;  %996 = vmatprep.subr.mxu1 %v208_v11  ;;  %v156_v28 = vld [vmem:[%s1978_s2 + $0x48] sm:$0xff]  ;;  %v203_v31 = vld [vmem:[%s1978_s2 + $0x1c0] sm:$0xff]  ;;  %v202_v35 = vld [vmem:[%s1978_s2 + $0x1b8] sm:$0xff] }
  0x29   :  { %962 = vmatpush3.msra.mxu0 %v160_v12  ;;  %997 = vmatpush3.msra.mxu1 %v192_v13  ;;  %v188_v29 = vld [vmem:[%s1978_s2 + $0x148] sm:$0xff]  ;;  %v155_v32 = vld [vmem:[%s1978_s2 + $0x40] sm:$0xff]  ;;  %v154_v36 = vld [vmem:[%s1978_s2 + $0x38] sm:$0xff] }
  0x2a   :  { %963 = vmatprep.subr.mxu0 %v175_v14  ;;  %998 = vmatprep.subr.mxu1 %v207_v15  ;;  %v187_v33 = vld [vmem:[%s1978_s2 + $0x140] sm:$0xff]  ;;  %v186_v37 = vld [vmem:[%s1978_s2 + $0x138] sm:$0xff]  ;;  %v169_v38 = vld [vmem:[%s1978_s2 + $0xb0] sm:$0xff] }
  0x2b   :  { %964 = vmatpush3.msra.mxu0 %v159_v16  ;;  %999 = vmatpush3.msra.mxu1 %v191_v17  ;;  %v201_v39 = vld [vmem:[%s1978_s2 + $0x1b0] sm:$0xff]  ;;  %v168_v42 = vld [vmem:[%s1978_s2 + $0xa8] sm:$0xff]  ;;  %v167_v46 = vld [vmem:[%s1978_s2 + $0xa0] sm:$0xff] }
  0x2c   :  { %965 = vmatprep.subr.mxu0 %v174_v18  ;;  %1000 = vmatprep.subr.mxu1 %v206_v19  ;;  %v153_v40 = vld [vmem:[%s1978_s2 + $0x30] sm:$0xff]  ;;  %v200_v43 = vld [vmem:[%s1978_s2 + $0x1a8] sm:$0xff]  ;;  %v199_v47 = vld [vmem:[%s1978_s2 + $0x1a0] sm:$0xff] }
  0x2d   :  { %966 = vmatpush3.msra.mxu0 %v158_v20  ;;  %1001 = vmatpush3.msra.mxu1 %v190_v21  ;;  %v185_v41 = vld [vmem:[%s1978_s2 + $0x130] sm:$0xff]  ;;  %v152_v44 = vld [vmem:[%s1978_s2 + $0x28] sm:$0xff]  ;;  %v151_v48 = vld [vmem:[%s1978_s2 + $0x20] sm:$0xff] }
  0x2e   :  { %967 = vmatprep.subr.mxu0 %v173_v22  ;;  %1002 = vmatprep.subr.mxu1 %v205_v23  ;;  %v184_v45 = vld [vmem:[%s1978_s2 + $0x128] sm:$0xff]  ;;  %v183_v49 = vld [vmem:[%s1978_s2 + $0x120] sm:$0xff]  ;;  %v166_v50 = vld [vmem:[%s1978_s2 + $0x98] sm:$0xff] }
  0x2f   :  { %968 = vmatpush3.msra.mxu0 %v157_v24  ;;  %1003 = vmatpush3.msra.mxu1 %v189_v25  ;;  %v198_v51 = vld [vmem:[%s1978_s2 + $0x198] sm:$0xff]  ;;  %v165_v54 = vld [vmem:[%s1978_s2 + $0x90] sm:$0xff]  ;;  %v164_v58 = vld [vmem:[%s1978_s2 + $0x88] sm:$0xff] }
  0x30   :  { %969 = vmatprep.subr.mxu0 %v172_v26  ;;  %1004 = vmatprep.subr.mxu1 %v204_v27  ;;  %v150_v52 = vld [vmem:[%s1978_s2 + $0x18] sm:$0xff]  ;;  %v197_v55 = vld [vmem:[%s1978_s2 + $0x190] sm:$0xff]  ;;  %v196_v59 = vld [vmem:[%s1978_s2 + $0x188] sm:$0xff] }
  0x31   :  { %970 = vmatpush3.msra.mxu0 %v156_v28  ;;  %1005 = vmatpush3.msra.mxu1 %v188_v29  ;;  %v182_v53 = vld [vmem:[%s1978_s2 + $0x118] sm:$0xff]  ;;  %v149_v56 = vld [vmem:[%s1978_s2 + $0x10] sm:$0xff]  ;;  %v148_v60 = vld [vmem:[%s1978_s2 + $0x8] sm:$0xff] }
  0x32   :  { %971 = vmatprep.subr.mxu0 %v171_v30  ;;  %1006 = vmatprep.subr.mxu1 %v203_v31  ;;  %v181_v57 = vld [vmem:[%s1978_s2 + $0x110] sm:$0xff]  ;;  %v180_v61 = vld [vmem:[%s1978_s2 + $0x108] sm:$0xff]  ;;  %v163_v62 = vld [vmem:[%s1978_s2 + $0x80] sm:$0xff] }
  0x33   :  { %972 = vmatpush3.msra.mxu0 %v155_v32  ;;  %1007 = vmatpush3.msra.mxu1 %v187_v33  ;;  %v195_v63 = vld [vmem:[%s1978_s2 + $0x180] sm:$0xff] }
  0x34   :  { %973 = vmatprep.subr.mxu0 %v170_v34  ;;  %1008 = vmatprep.subr.mxu1 %v202_v35  ;;  %v147_v2 = vld [vmem:[%s1978_s2] sm:$0xff] }
  0x35   :  { %974 = vmatpush3.msra.mxu0 %v154_v36  ;;  %1009 = vmatpush3.msra.mxu1 %v186_v37  ;;  %v179_v3 = vld [vmem:[%s1978_s2 + $0x100] sm:$0xff] }
  0x36   :  { %975 = vmatprep.subr.mxu0 %v169_v38  ;;  %1010 = vmatprep.subr.mxu1 %v201_v39  ;;  %v1578_v30 = vld [vmem:[%s1979_s3] ss:$0 sm:$0xff]  ;;  %v146_v39 = vld [vmem:[%s1977_s1 + $0x3f8] sm:$0xff]  ;;  %s1153_s3 = smov 96  }
  0x37   :  { %976 = vmatpush3.msra.mxu0 %v153_v40  ;;  %1011 = vmatpush3.msra.mxu1 %v185_v41  ;;  %v143_v40 = vld [vmem:[%s1977_s1 + $0x3e0] sm:$0xff]  ;;  %v145_v41 = vld [vmem:[%s1977_s1 + $0x3f0] sm:$0xff] }
  0x38   :  { %977 = vmatprep.subr.mxu0 %v168_v42  ;;  %1012 = vmatprep.subr.mxu1 %v200_v43  ;;  %v140_v42 = vld [vmem:[%s1977_s1 + $0x3c8] sm:$0xff]  ;;  %v142_v43 = vld [vmem:[%s1977_s1 + $0x3d8] sm:$0xff] }
  0x39   :  { %978 = vmatpush3.msra.mxu0 %v152_v44  ;;  %1013 = vmatpush3.msra.mxu1 %v184_v45  ;;  %v139_v44 = vld [vmem:[%s1977_s1 + $0x3c0] sm:$0xff]  ;;  %v141_v45 = vld [vmem:[%s1977_s1 + $0x3d0] sm:$0xff] }
  0x3a   :  { %979 = vmatprep.subr.mxu0 %v167_v46  ;;  %1014 = vmatprep.subr.mxu1 %v199_v47  ;;  %v136_v46 = vld [vmem:[%s1977_s1 + $0x3a8] sm:$0xff]  ;;  %v138_v47 = vld [vmem:[%s1977_s1 + $0x3b8] sm:$0xff] }
  0x3b   :  { %980 = vmatpush3.msra.mxu0 %v151_v48  ;;  %1015 = vmatpush3.msra.mxu1 %v183_v49  ;;  %v135_v48 = vld [vmem:[%s1977_s1 + $0x3a0] sm:$0xff]  ;;  %v137_v49 = vld [vmem:[%s1977_s1 + $0x3b0] sm:$0xff] }
  0x3c   :  { %981 = vmatprep.subr.mxu0 %v166_v50  ;;  %1016 = vmatprep.subr.mxu1 %v198_v51  ;;  %v132_v50 = vld [vmem:[%s1977_s1 + $0x388] sm:$0xff]  ;;  %v134_v51 = vld [vmem:[%s1977_s1 + $0x398] sm:$0xff] }
  0x3d   :  { %982 = vmatpush3.msra.mxu0 %v150_v52  ;;  %1017 = vmatpush3.msra.mxu1 %v182_v53  ;;  %v131_v52 = vld [vmem:[%s1977_s1 + $0x380] sm:$0xff] }
  0x3e   :  { %983 = vmatprep.subr.mxu0 %v165_v54  ;;  %1018 = vmatprep.subr.mxu1 %v197_v55  ;;  %v133_v54 = vld [vmem:[%s1977_s1 + $0x390] sm:$0xff]  ;;  %v128_v55 = vld [vmem:[%s1977_s1 + $0x368] sm:$0xff] }
  0x3f   :  { %984 = vmatpush3.msra.mxu0 %v149_v56  ;;  %1019 = vmatpush3.msra.mxu1 %v181_v57  ;;  %v130_v56 = vld [vmem:[%s1977_s1 + $0x378] sm:$0xff]  ;;  %v127_v57 = vld [vmem:[%s1977_s1 + $0x360] sm:$0xff] }
  0x40   :  { %985 = vmatprep.subr.mxu0 %v164_v58  ;;  %1020 = vmatprep.subr.mxu1 %v196_v59  ;;  %v129_v58 = vld [vmem:[%s1977_s1 + $0x370] sm:$0xff]  ;;  %v124_v59 = vld [vmem:[%s1977_s1 + $0x348] sm:$0xff] }
  0x41   :  { %986 = vmatpush3.msra.mxu0 %v148_v60  ;;  %1021 = vmatpush3.msra.mxu1 %v180_v61  ;;  %v126_v60 = vld [vmem:[%s1977_s1 + $0x358] sm:$0xff]  ;;  %v123_v61 = vld [vmem:[%s1977_s1 + $0x340] sm:$0xff] }
  0x42   :  { %987 = vmatprep.subr.mxu0 %v163_v62  ;;  %1022 = vmatprep.subr.mxu1 %v195_v63  ;;  %v125_v62 = vld [vmem:[%s1977_s1 + $0x350] sm:$0xff]  ;;  %v120_v63 = vld [vmem:[%s1977_s1 + $0x328] sm:$0xff] }
  0x43   :  { %988 = vmatpush3.msra.mxu0 %v147_v2  ;;  %1023 = vmatpush3.msra.mxu1 %v179_v3  ;;  %v122_v2 = vld [vmem:[%s1977_s1 + $0x338] sm:$0xff]  ;;  %v119_v3 = vld [vmem:[%s1977_s1 + $0x320] sm:$0xff] }
  0x44   :  { %602 = vrot.lane.b32.xlu1 %v1375_v0, %s1149_s10  ;;  %682 = vmatprep.subr.mxu1 %v146_v39  ;;  %v86_v39 = vld [vmem:[%s1977_s1 + $0x218] sm:$0xff] }
  0x48   :  { %777 = vrot.lane.b32.xlu1 %v1578_v30, %s1153_s3 }
  0xe3   :  { %v342_v4 = vpop.f32.mrf.mxu0  ;;  %v413_v5 = vpop.f32.mrf.mxu1 }
  0xe4   :  { %v422_v6 = vmin.f32 %v342_v4, 0.0  ;;  %v424_v7 = vmin.f32 %v413_v5, 0.0  ;;  %vm418_vm1 = vcmp.gt.f32.partialorder %v342_v4, 0.0  ;;  %vm420_vm3 = vcmp.gt.f32.partialorder %v413_v5, 0.0 }
  0xe5   :  { %v344_v8 = vpop.f32.mrf.mxu0  ;;  %v415_v9 = vpop.f32.mrf.mxu1 }
  0xe6   :  { %v426_v10 = vmul.f32 1.442695, %v422_v6  ;;  %v430_v11 = vmul.f32 1.442695, %v424_v7  ;;  %v423_v12 = vmin.f32 %v344_v8, 0.0  ;;  %v425_v13 = vmin.f32 %v415_v9, 0.0 }
  0xe7   :  { %vm419_vm0 = vcmp.gt.f32.partialorder %v344_v8, 0.0  ;;  %vm421_vm2 = vcmp.gt.f32.partialorder %v415_v9, 0.0  ;;  %v118_v6 = vld [vmem:[%s1977_s1 + $0x318] sm:$0xff]  ;;  %v115_v7 = vld [vmem:[%s1977_s1 + $0x300] sm:$0xff] }
  0xe8   :  { %1104 = vpow2.f32 %v426_v10  ;;  %v428_v14 = vmul.f32 1.442695, %v423_v12  ;;  %v432_v15 = vmul.f32 1.442695, %v425_v13  ;;  %v114_v10 = vld [vmem:[%s1977_s1 + $0x2f8] sm:$0xff]  ;;  %v113_v12 = vld [vmem:[%s1977_s1 + $0x2f0] sm:$0xff] }
  0xe9   :  { %1106 = vpow2.f32 %v430_v11  ;;  %v111_v11 = vld [vmem:[%s1977_s1 + $0x2e0] sm:$0xff]  ;;  %v108_v13 = vld [vmem:[%s1977_s1 + $0x2c8] sm:$0xff] }
  0xea   :  { %1108 = vpow2.f32 %v428_v14  ;;  %v110_v14 = vld [vmem:[%s1977_s1 + $0x2d8] sm:$0xff] }
  0xeb   :  { %1110 = vpow2.f32 %v432_v15  ;;  %v107_v15 = vld [vmem:[%s1977_s1 + $0x2c0] sm:$0xff] }
  0xf5   :  { %v1105_v16 = vpop.eup %1104 }
  0xf6   :  { %v1107_v17 = vpop.eup %1106  ;;  %v948_v19 = vadd.f32 -1.0, %v1105_v16  ;;  %v109_v16 = vld [vmem:[%s1977_s1 + $0x2d0] sm:$0xff] }
  0xf7   :  { %v1109_v18 = vpop.eup %1108  ;;  %v950_v22 = vadd.f32 -1.0, %v1107_v17  ;;  %v104_v17 = vld [vmem:[%s1977_s1 + $0x2a8] sm:$0xff] }
  0xf8   :  { %v1111_v20 = vpop.eup %1110  ;;  %v949_v21 = vadd.f32 -1.0, %v1109_v18  ;;  %v438_v26 = vsel %vm418_vm1, %v342_v4, %v948_v19  ;;  %v121_v4 = vld [vmem:[%s1977_s1 + $0x330] sm:$0xff]  ;;  %v106_v18 = vld [vmem:[%s1977_s1 + $0x2b8] sm:$0xff]  ;;  %v103_v19 = vld [vmem:[%s1977_s1 + $0x2a0] sm:$0xff] }
  0xf9   :  { %v951_v23 = vadd.f32 -1.0, %v1111_v20  ;;  %v440_v27 = vsel %vm420_vm3, %v413_v5, %v950_v22  ;;  %v116_v5 = vld [vmem:[%s1977_s1 + $0x308] sm:$0xff]  ;;  %v105_v20 = vld [vmem:[%s1977_s1 + $0x2b0] sm:$0xff]  ;;  %v102_v22 = vld [vmem:[%s1977_s1 + $0x298] sm:$0xff] }
  0xfa   :  { %v439_v24 = vsel %vm419_vm0, %v344_v8, %v949_v21  ;;  %v117_v8 = vld [vmem:[%s1977_s1 + $0x310] sm:$0xff]  ;;  %v100_v21 = vld [vmem:[%s1977_s1 + $0x288] sm:$0xff] }
  0xfb   :  { %512 = vmatprep.mubr.f32.mxu0 %v439_v24  ;;  %v441_v25 = vsel %vm421_vm2, %v415_v9, %v951_v23  ;;  %v112_v9 = vld [vmem:[%s1977_s1 + $0x2e8] sm:$0xff]  ;;  %v99_v23 = vld [vmem:[%s1977_s1 + $0x280] sm:$0xff]  ;;  %v101_v24 = vld [vmem:[%s1977_s1 + $0x290] sm:$0xff] }
  0xfc   :  { %582 = vmatprep.mubr.f32.mxu1 %v441_v25  ;;  %513 = vmatmul.mubr.f32.vlgmr.msra.gmra.mxu0 %v438_v26  ;;  %v96_v25 = vld [vmem:[%s1977_s1 + $0x268] sm:$0xff]  ;;  %v98_v26 = vld [vmem:[%s1977_s1 + $0x278] sm:$0xff] }
  0xfd   :  { %583 = vmatmul.mubr.f32.vlgmr.msra.gmra.mxu1 %v440_v27  ;;  %675 = vmatprep.mubr.f32.mxu0 %v1148_v1  ;;  %v95_v27 = vld [vmem:[%s1977_s1 + $0x260] sm:$0xff] }
  0xfe   :  { %746 = vmatprep.mubr.f32.mxu1 %v1148_v1  ;;  %v144_v1 = vld [vmem:[%s1977_s1 + $0x3e8] sm:$0xff]  ;;  %683 = vmatpush1.msra.mxu1 %v145_v41  ;;  %v85_v41 = vld [vmem:[%s1977_s1 + $0x210] sm:$0xff] }
  0xff   :  { %611 = vmatprep.subr.mxu0 %v144_v1  ;;  %684 = vmatprep.subr.mxu1 %v142_v43  ;;  %v84_v1 = vld [vmem:[%s1977_s1 + $0x208] sm:$0xff]  ;;  %v274_v43 = vld [vmem:[%s1978_s2 + $0x3f8] sm:$0xff] }
 0x100   :  { %612 = vmatpush1.msra.mxu0 %v143_v40  ;;  %685 = vmatpush1.msra.mxu1 %v141_v45  ;;  %v83_v40 = vld [vmem:[%s1977_s1 + $0x200] sm:$0xff] }
 0x101   :  { %613 = vmatprep.subr.mxu0 %v140_v42  ;;  %686 = vmatprep.subr.mxu1 %v138_v47  ;;  %v242_v42 = vld [vmem:[%s1978_s2 + $0x2f8] sm:$0xff]  ;;  %v603_v47 = vpop.permute.xlu1 %602 }
 0x102   :  { %614 = vmatpush1.msra.mxu0 %v139_v44  ;;  %687 = vmatpush1.msra.mxu1 %v137_v49 }
 0x103   :  { %615 = vmatprep.subr.mxu0 %v136_v46  ;;  %688 = vmatprep.subr.mxu1 %v134_v51  ;;  %v226_v51 = vld [vmem:[%s1978_s2 + $0x278] sm:$0xff] }
 0x104   :  { %616 = vmatpush1.msra.mxu0 %v135_v48  ;;  %689 = vmatpush1.msra.mxu1 %v133_v54  ;;  %v225_v54 = vld [vmem:[%s1978_s2 + $0x270] sm:$0xff] }
 0x105   :  { %617 = vmatprep.subr.mxu0 %v132_v50  ;;  %690 = vmatprep.subr.mxu1 %v130_v56  ;;  %v240_v56 = vld [vmem:[%s1978_s2 + $0x2e8] sm:$0xff] }
 0x106   :  { %618 = vmatpush1.msra.mxu0 %v131_v52  ;;  %691 = vmatpush1.msra.mxu1 %v129_v58  ;;  %v224_v58 = vld [vmem:[%s1978_s2 + $0x268] sm:$0xff] }
 0x107   :  { %619 = vmatprep.subr.mxu0 %v128_v55  ;;  %692 = vmatprep.subr.mxu1 %v126_v60  ;;  %v257_v55 = vld [vmem:[%s1978_s2 + $0x370] sm:$0xff]  ;;  %v239_v60 = vld [vmem:[%s1978_s2 + $0x2e0] sm:$0xff] }
 0x108   :  { %620 = vmatpush1.msra.mxu0 %v127_v57  ;;  %693 = vmatpush1.msra.mxu1 %v125_v62  ;;  %v272_v57 = vld [vmem:[%s1978_s2 + $0x3e8] sm:$0xff]  ;;  %v223_v62 = vld [vmem:[%s1978_s2 + $0x260] sm:$0xff] }
 0x109   :  { %621 = vmatprep.subr.mxu0 %v124_v59  ;;  %694 = vmatprep.subr.mxu1 %v122_v2  ;;  %v256_v59 = vld [vmem:[%s1978_s2 + $0x368] sm:$0xff]  ;;  %v238_v2 = vld [vmem:[%s1978_s2 + $0x2d8] sm:$0xff] }
 0x10a   :  { %622 = vmatpush1.msra.mxu0 %v123_v61  ;;  %695 = vmatpush1.msra.mxu1 %v121_v4  ;;  %v271_v61 = vld [vmem:[%s1978_s2 + $0x3e0] sm:$0xff]  ;;  %v222_v4 = vld [vmem:[%s1978_s2 + $0x258] sm:$0xff] }
 0x10b   :  { %623 = vmatprep.subr.mxu0 %v120_v63  ;;  %696 = vmatprep.subr.mxu1 %v118_v6  ;;  %v255_v63 = vld [vmem:[%s1978_s2 + $0x360] sm:$0xff]  ;;  %v237_v6 = vld [vmem:[%s1978_s2 + $0x2d0] sm:$0xff] }
 0x10c   :  { %624 = vmatpush1.msra.mxu0 %v119_v3  ;;  %697 = vmatpush1.msra.mxu1 %v117_v8  ;;  %v270_v3 = vld [vmem:[%s1978_s2 + $0x3d8] sm:$0xff]  ;;  %v221_v8 = vld [vmem:[%s1978_s2 + $0x250] sm:$0xff] }
 0x10d   :  { %625 = vmatprep.subr.mxu0 %v116_v5  ;;  %698 = vmatprep.subr.mxu1 %v114_v10  ;;  %v254_v5 = vld [vmem:[%s1978_s2 + $0x358] sm:$0xff]  ;;  %v236_v10 = vld [vmem:[%s1978_s2 + $0x2c8] sm:$0xff] }
 0x10e   :  { %626 = vmatpush1.msra.mxu0 %v115_v7  ;;  %699 = vmatpush1.msra.mxu1 %v113_v12  ;;  %v269_v7 = vld [vmem:[%s1978_s2 + $0x3d0] sm:$0xff]  ;;  %v220_v12 = vld [vmem:[%s1978_s2 + $0x248] sm:$0xff] }
 0x10f   :  { %627 = vmatprep.subr.mxu0 %v112_v9  ;;  %700 = vmatprep.subr.mxu1 %v110_v14  ;;  %v253_v9 = vld [vmem:[%s1978_s2 + $0x350] sm:$0xff]  ;;  %v235_v14 = vld [vmem:[%s1978_s2 + $0x2c0] sm:$0xff] }
 0x110   :  { %628 = vmatpush1.msra.mxu0 %v111_v11  ;;  %701 = vmatpush1.msra.mxu1 %v109_v16  ;;  %v268_v11 = vld [vmem:[%s1978_s2 + $0x3c8] sm:$0xff]  ;;  %v219_v16 = vld [vmem:[%s1978_s2 + $0x240] sm:$0xff] }
 0x111   :  { %629 = vmatprep.subr.mxu0 %v108_v13  ;;  %702 = vmatprep.subr.mxu1 %v106_v18  ;;  %v252_v13 = vld [vmem:[%s1978_s2 + $0x348] sm:$0xff]  ;;  %v234_v18 = vld [vmem:[%s1978_s2 + $0x2b8] sm:$0xff] }
 0x112   :  { %630 = vmatpush1.msra.mxu0 %v107_v15  ;;  %703 = vmatpush1.msra.mxu1 %v105_v20  ;;  %v267_v15 = vld [vmem:[%s1978_s2 + $0x3c0] sm:$0xff]  ;;  %v218_v20 = vld [vmem:[%s1978_s2 + $0x238] sm:$0xff] }
 0x113   :  { %631 = vmatprep.subr.mxu0 %v104_v17  ;;  %704 = vmatprep.subr.mxu1 %v102_v22  ;;  %v251_v17 = vld [vmem:[%s1978_s2 + $0x340] sm:$0xff]  ;;  %v233_v22 = vld [vmem:[%s1978_s2 + $0x2b0] sm:$0xff] }
 0x114   :  { %632 = vmatpush1.msra.mxu0 %v103_v19  ;;  %705 = vmatpush1.msra.mxu1 %v101_v24  ;;  %v266_v19 = vld [vmem:[%s1978_s2 + $0x3b8] sm:$0xff]  ;;  %v217_v24 = vld [vmem:[%s1978_s2 + $0x230] sm:$0xff] }
 0x115   :  { %633 = vmatprep.subr.mxu0 %v100_v21  ;;  %706 = vmatprep.subr.mxu1 %v98_v26  ;;  %v250_v21 = vld [vmem:[%s1978_s2 + $0x338] sm:$0xff]  ;;  %v232_v26 = vld [vmem:[%s1978_s2 + $0x2a8] sm:$0xff] }
 0x116   :  { %634 = vmatpush1.msra.mxu0 %v99_v23  ;;  %v265_v23 = vld [vmem:[%s1978_s2 + $0x3b0] sm:$0xff] }
 0x117   :  { %635 = vmatprep.subr.mxu0 %v96_v25  ;;  %v249_v25 = vld [vmem:[%s1978_s2 + $0x330] sm:$0xff] }
 0x118   :  { %636 = vmatpush1.msra.mxu0 %v95_v27  ;;  %v264_v27 = vld [vmem:[%s1978_s2 + $0x3a8] sm:$0xff] }
 0x1bc   :  { %v989_v28 = vpop.f32.mrf.mxu0 }
 0x1bd   :  { %v1024_v29 = vpop.f32.mrf.mxu1 }
 0x1be   :  { %v990_v31 = vpop.f32.mrf.mxu0 }
 0x1bf   :  { %v991_v32 = vadd.f32 %v990_v31, %v989_v28  ;;  %v1025_v33 = vpop.f32.mrf.mxu1  ;;  %v97_v28 = vld [vmem:[%s1977_s1 + $0x270] sm:$0xff]  ;;  %v94_v31 = vld [vmem:[%s1977_s1 + $0x258] sm:$0xff] }
 0x1c0   :  { %v1026_v35 = vadd.f32 %v1025_v33, %v1024_v29  ;;  %v92_v29 = vld [vmem:[%s1977_s1 + $0x248] sm:$0xff]  ;;  %707 = vmatpush1.msra.mxu1 %v97_v28  ;;  %v93_v33 = vld [vmem:[%s1977_s1 + $0x250] sm:$0xff] }
 0x1c1   :  { %v515_v34 = vadd.f32 %v991_v32, %v1578_v30  ;;  %637 = vmatprep.subr.mxu0 %v92_v29  ;;  %708 = vmatprep.subr.mxu1 %v94_v31  ;;  %v91_v32 = vld [vmem:[%s1977_s1 + $0x240] sm:$0xff]  ;;  %v216_v28 = vld [vmem:[%s1978_s2 + $0x228] sm:$0xff] }
 0x1c2   :  { %638 = vmatpush1.msra.mxu0 %v91_v32  ;;  %709 = vmatpush1.msra.mxu1 %v93_v33  ;;  %v248_v29 = vld [vmem:[%s1978_s2 + $0x328] sm:$0xff]  ;;  %v231_v31 = vld [vmem:[%s1978_s2 + $0x2a0] sm:$0xff] }
 0x1c3   :  { %v1581_v36 = vadd.f32 %v1026_v35, %v515_v34  ;;  %v88_v34 = vld [vmem:[%s1977_s1 + $0x228] sm:$0xff]  ;;  %v90_v35 = vld [vmem:[%s1977_s1 + $0x238] sm:$0xff]  ;;  %v263_v32 = vld [vmem:[%s1978_s2 + $0x3a0] sm:$0xff] }
 0x1c4   :  { %639 = vmatprep.subr.mxu0 %v88_v34  ;;  %710 = vmatprep.subr.mxu1 %v90_v35  ;;  %v215_v33 = vld [vmem:[%s1978_s2 + $0x220] sm:$0xff]  ;;  %v230_v35 = vld [vmem:[%s1978_s2 + $0x298] sm:$0xff] }
 0x1c5   :  { %v588_v37 = vmul.f32 0.5, %v1581_v36  ;;  %v247_v34 = vld [vmem:[%s1978_s2 + $0x320] sm:$0xff] }
 0x1c7   :  { %v589_v38 = vmul.f32 1.442695, %v588_v37  ;;  %v87_v37 = vld [vmem:[%s1977_s1 + $0x220] sm:$0xff] }
 0x1c8   :  { %640 = vmatpush1.msra.mxu0 %v87_v37  ;;  %v262_v37 = vld [vmem:[%s1978_s2 + $0x398] sm:$0xff] }
 0x1c9   :  { %1112 = vpow2.f32 %v589_v38  ;;  %v89_v38 = vld [vmem:[%s1977_s1 + $0x230] sm:$0xff]  ;;  %641 = vmatprep.subr.mxu0 %v84_v1  ;;  %v246_v1 = vld [vmem:[%s1978_s2 + $0x318] sm:$0xff] }
 0x1ca   :  { %711 = vmatpush1.msra.mxu1 %v89_v38  ;;  %642 = vmatpush1.msra.mxu0 %v83_v40  ;;  %v214_v38 = vld [vmem:[%s1978_s2 + $0x218] sm:$0xff]  ;;  %v261_v40 = vld [vmem:[%s1978_s2 + $0x390] sm:$0xff] }
 0x1cb   :  { %712 = vmatprep.subr.mxu1 %v86_v39  ;;  %1027 = vmatprep.subr.mxu0 %v242_v42  ;;  %v229_v39 = vld [vmem:[%s1978_s2 + $0x290] sm:$0xff] }
 0x1cc   :  { %713 = vmatpush1.msra.mxu1 %v85_v41  ;;  %v213_v41 = vld [vmem:[%s1978_s2 + $0x210] sm:$0xff] }
 0x1cd   :  { %1062 = vmatprep.subr.mxu1 %v274_v43  ;;  %v245_v42 = vld [vmem:[%s1978_s2 + $0x310] sm:$0xff]  ;;  %v228_v43 = vld [vmem:[%s1978_s2 + $0x288] sm:$0xff] }
 0x1d6   :  { %v1113_v53 = vpop.eup %1112 }
 0x1d7   :  { %592 = vrot.lane.b32.xlu0 %v1113_v53, %s1150_s16  ;;  %v241_v53 = vld [vmem:[%s1978_s2 + $0x2f0] sm:$0xff] }
 0x249   :  { %v593_v44 = vpop.permute.xlu0 %592 }
 0x24a   :  { %v595_v45 = vmul.f32 %v593_v44, %v1375_v0  ;;  %v258_v0 = vld [vmem:[%s1978_s2 + $0x378] sm:$0xff]  ;;  %v260_v44 = vld [vmem:[%s1978_s2 + $0x388] sm:$0xff] }
 0x24c   :  { %597 = vrot.lane.b32.xlu0 %v595_v45, %s1151_s30  ;;  %v212_v45 = vld [vmem:[%s1978_s2 + $0x208] sm:$0xff] }
 0x250   :  { %926 = vrot.lane.b32.xlu0 %v1581_v36, %s1152_s5 }
 0x2be   :  { %v598_v46 = vpop.permute.xlu0 %597 }
 0x2bf   :  { %v600_v48 = vadd.f32 %v598_v46, %v1581_v36  ;;  %v273_v36 = vld [vmem:[%s1978_s2 + $0x3f0] sm:$0xff]  ;;  %v244_v46 = vld [vmem:[%s1978_s2 + $0x308] sm:$0xff] }
 0x2c1   :  { %v606_v49 = vsel %vm605_vm4, %v600_v48, %v603_v47  ;;  %v227_v47 = vld [vmem:[%s1978_s2 + $0x280] sm:$0xff] }
 0x2c2   :  { %v608_v50 = vsel %vm607_vm5, %v606_v49, 0.0  ;;  %v259_v48 = vld [vmem:[%s1978_s2 + $0x380] sm:$0xff] }
 0x2c3   :  { %v610_v52 = vsel %vm609_vm6, %v608_v50, 1.0  ;;  %v211_v49 = vld [vmem:[%s1978_s2 + $0x200] sm:$0xff] }
 0x2c4   :  { %676 = vmatmul.mubr.f32.vlgmr.msra.gmra.mxu0 %v610_v52  ;;  %747 = vmatmul.mubr.f32.vlgmr.msra.gmra.mxu1 %v610_v52  ;;  %v243_v50 = vld [vmem:[%s1978_s2 + $0x300] sm:$0xff]  ;;  %s1154_s2 = smov [#allocation2]  }
 0x2c5   :  { %1028 = vmatpush3.msra.mxu0 %v226_v51  ;;  %1063 = vmatpush3.msra.mxu1 %v258_v0  ;;  %s940_s13 = sshll.u32 %s1154_s2, 4  ;;  %s941_s13 = int_to_ptr.vmem [resolvable:$true] %s940_s13 }
 0x2c6   :  { %1029 = vmatprep.subr.mxu0 %v241_v53  ;;  %1064 = vmatprep.subr.mxu1 %v273_v36  ;;  %s1126_s14 = scalar_lea.vmem %s941_s13, 128  ;;  %p1131_p1 = scmp.lt.s32.totalorder %s941_s13, %s941_s13 }
 0x2c7   :  { %1030 = vmatpush3.msra.mxu0 %v225_v54  ;;  %1065 = vmatpush3.msra.mxu1 %v257_v55  ;;  %p1127_p0 = scmp.ne.s32.totalorder %s941_s13, %s1126_s14  ;;  %p1132_p2 = scmp.lt.s32.totalorder %s1126_s14, %s1126_s14 }
 0x2c8   :  { %1031 = vmatprep.subr.mxu0 %v240_v56  ;;  %1066 = vmatprep.subr.mxu1 %v272_v57 }
 0x2c9   :  { %1032 = vmatpush3.msra.mxu0 %v224_v58  ;;  %1067 = vmatpush3.msra.mxu1 %v256_v59  ;;  %p1133_p3 = por %p1132_p2, %p1131_p1 }
 0x2ca   :  { %1033 = vmatprep.subr.mxu0 %v239_v60  ;;  %1068 = vmatprep.subr.mxu1 %v271_v61 }
 0x2cb   :  { %1034 = vmatpush3.msra.mxu0 %v223_v62  ;;  %1069 = vmatpush3.msra.mxu1 %v255_v63  ;;  %p1134_p4 = pnand %p1133_p3, %p1127_p0 }
 0x2cc   :  { %1035 = vmatprep.subr.mxu0 %v238_v2  ;;  %1070 = vmatprep.subr.mxu1 %v270_v3 }
 0x2cd   :  { %1036 = vmatpush3.msra.mxu0 %v222_v4  ;;  %1071 = vmatpush3.msra.mxu1 %v254_v5 }
 0x2ce   :  { %1037 = vmatprep.subr.mxu0 %v237_v6  ;;  %1072 = vmatprep.subr.mxu1 %v269_v7 }
 0x2cf   :  { %1038 = vmatpush3.msra.mxu0 %v221_v8  ;;  %1073 = vmatpush3.msra.mxu1 %v253_v9 }
 0x2d0   :  { %1039 = vmatprep.subr.mxu0 %v236_v10  ;;  %1074 = vmatprep.subr.mxu1 %v268_v11 }
 0x2d1   :  { %1040 = vmatpush3.msra.mxu0 %v220_v12  ;;  %1075 = vmatpush3.msra.mxu1 %v252_v13  ;;  %v778_v13 = vpop.permute.xlu1 %777 }
 0x2d2   :  { %1041 = vmatprep.subr.mxu0 %v235_v14  ;;  %1076 = vmatprep.subr.mxu1 %v267_v15 }
 0x2d3   :  { %1042 = vmatpush3.msra.mxu0 %v219_v16  ;;  %1077 = vmatpush3.msra.mxu1 %v251_v17 }
 0x2d4   :  { %1043 = vmatprep.subr.mxu0 %v234_v18  ;;  %1078 = vmatprep.subr.mxu1 %v266_v19 }
 0x2d5   :  { %1044 = vmatpush3.msra.mxu0 %v218_v20  ;;  %1079 = vmatpush3.msra.mxu1 %v250_v21 }
 0x2d6   :  { %1045 = vmatprep.subr.mxu0 %v233_v22  ;;  %1080 = vmatprep.subr.mxu1 %v265_v23 }
 0x2d7   :  { %1046 = vmatpush3.msra.mxu0 %v217_v24  ;;  %1081 = vmatpush3.msra.mxu1 %v249_v25  ;;  %v927_v24 = vpop.permute.xlu0 %926 }
 0x2d8   :  { %1047 = vmatprep.subr.mxu0 %v232_v26  ;;  %1082 = vmatprep.subr.mxu1 %v264_v27 }
 0x2d9   :  { %1048 = vmatpush3.msra.mxu0 %v216_v28  ;;  %1083 = vmatpush3.msra.mxu1 %v248_v29 }
 0x2da   :  { %1049 = vmatprep.subr.mxu0 %v231_v31  ;;  %1084 = vmatprep.subr.mxu1 %v263_v32 }
 0x2db   :  { %1050 = vmatpush3.msra.mxu0 %v215_v33  ;;  %1085 = vmatpush3.msra.mxu1 %v247_v34 }
 0x2dc   :  { %1051 = vmatprep.subr.mxu0 %v230_v35  ;;  %1086 = vmatprep.subr.mxu1 %v262_v37 }
 0x2dd   :  { %1052 = vmatpush3.msra.mxu0 %v214_v38  ;;  %1087 = vmatpush3.msra.mxu1 %v246_v1 }
 0x2de   :  { %1053 = vmatprep.subr.mxu0 %v229_v39  ;;  %1088 = vmatprep.subr.mxu1 %v261_v40 }
 0x2df   :  { %1054 = vmatpush3.msra.mxu0 %v213_v41  ;;  %1089 = vmatpush3.msra.mxu1 %v245_v42 }
 0x2e0   :  { %1055 = vmatprep.subr.mxu0 %v228_v43  ;;  %1090 = vmatprep.subr.mxu1 %v260_v44 }
 0x2e1   :  { %1056 = vmatpush3.msra.mxu0 %v212_v45  ;;  %1091 = vmatpush3.msra.mxu1 %v244_v46 }
 0x2e2   :  { %1057 = vmatprep.subr.mxu0 %v227_v47  ;;  %1092 = vmatprep.subr.mxu1 %v259_v48 }
 0x2e3   :  { %1058 = vmatpush3.msra.mxu0 %v211_v49  ;;  %1093 = vmatpush3.msra.mxu1 %v243_v50 }
 0x384   :  { %v677_v51 = vpop.f32.mrf.mxu0  ;;  %v748_v0 = vpop.f32.mrf.mxu1 }
 0x385   :  { %v757_v52 = vmin.f32 %v677_v51, 0.0  ;;  %v759_v53 = vmin.f32 %v748_v0, 0.0  ;;  %vm753_vm8 = vcmp.gt.f32.partialorder %v677_v51, 0.0  ;;  %vm755_vm10 = vcmp.gt.f32.partialorder %v748_v0, 0.0 }
 0x386   :  { %v679_v36 = vpop.f32.mrf.mxu0  ;;  %v750_v54 = vpop.f32.mrf.mxu1 }
 0x387   :  { %v761_v55 = vmul.f32 1.442695, %v757_v52  ;;  %v765_v56 = vmul.f32 1.442695, %v759_v53  ;;  %v758_v57 = vmin.f32 %v679_v36, 0.0  ;;  %v760_v58 = vmin.f32 %v750_v54, 0.0 }
 0x388   :  { %vm754_vm7 = vcmp.gt.f32.partialorder %v679_v36, 0.0  ;;  %vm756_vm9 = vcmp.gt.f32.partialorder %v750_v54, 0.0 }
 0x389   :  { %1114 = vpow2.f32 %v761_v55  ;;  %v763_v59 = vmul.f32 1.442695, %v758_v57  ;;  %v767_v60 = vmul.f32 1.442695, %v760_v58 }
 0x38a   :  { %1116 = vpow2.f32 %v765_v56 }
 0x38b   :  { %1118 = vpow2.f32 %v763_v59 }
 0x38c   :  { %1120 = vpow2.f32 %v767_v60 }
 0x396   :  { %v1115_v61 = vpop.eup %1114 }
 0x397   :  { %v1117_v62 = vpop.eup %1116  ;;  %v953_v30 = vadd.f32 -1.0, %v1115_v61 }
 0x398   :  { %v1119_v63 = vpop.eup %1118  ;;  %v955_v4 = vadd.f32 -1.0, %v1117_v62 }
 0x399   :  { %v1121_v2 = vpop.eup %1120  ;;  %v954_v3 = vadd.f32 -1.0, %v1119_v63  ;;  %v773_v8 = vsel %vm753_vm8, %v677_v51, %v953_v30 }
 0x39a   :  { %v956_v5 = vadd.f32 -1.0, %v1121_v2  ;;  %v775_v9 = vsel %vm755_vm10, %v748_v0, %v955_v4 }
 0x39b   :  { %v774_v6 = vsel %vm754_vm7, %v679_v36, %v954_v3 }
 0x39c   :  { %844 = vmatprep.mubr.f32.mxu0 %v774_v6  ;;  %v776_v7 = vsel %vm756_vm9, %v750_v54, %v956_v5 }
 0x39d   :  { %914 = vmatprep.mubr.f32.mxu1 %v776_v7  ;;  %845 = vmatmul.mubr.f32.vlgmr.msra.gmra.mxu0 %v773_v8 }
 0x39e   :  { %915 = vmatmul.mubr.f32.vlgmr.msra.gmra.mxu1 %v775_v9 }
 0x45d   :  { %v1059_v10 = vpop.f32.mrf.mxu0 }
 0x45e   :  { %v1094_v11 = vpop.f32.mrf.mxu1 }
 0x45f   :  { %v1060_v12 = vpop.f32.mrf.mxu0 }
 0x460   :  { %v1061_v14 = vadd.f32 %v1060_v12, %v1059_v10  ;;  %v1095_v15 = vpop.f32.mrf.mxu1 }
 0x461   :  { %v1096_v16 = vadd.f32 %v1095_v15, %v1094_v11 }
 0x462   :  { %v847_v17 = vadd.f32 %v1061_v14, %v778_v13 }
 0x464   :  { %v917_v18 = vadd.f32 %v1096_v16, %v847_v17 }
 0x466   :  { %v920_v19 = vsub.f32 0.0, %v917_v18 }
 0x468   :  { %v921_v20 = vmul.f32 1.442695, %v920_v19 }
 0x46a   :  { %1122 = vpow2.f32 %v921_v20 }
 0x477   :  { %v1123_v21 = vpop.eup %1122 }
 0x478   :  { %v923_v22 = vadd.f32 1.0, %v1123_v21 }
 0x47a   :  { %1124 = vrcp.f32 %v923_v22 }
 0x487   :  { %v1125_v23 = vpop.eup %1124 }
 0x488   :  { %v930_v25 = vsel %vm929_vm11, %v1125_v23, %v927_v24 }
 0x489   :  { %v932_v26 = vsel %vm931_vm12, %v930_v25, 0.0 }
 0x48a   :  { %933 = vst [vmem:[#allocation2] sm:$0xff] %v932_v26 }
 0x48b   :  { %1137 = shalt.err (!%p1134_p4)
}
 0x48c   :  { %943 = dma.vmem_to_hbm [thread:$0]  %s941_s13, 128, %s1980_s4, [#allocation3]  }
 0x48d   :  { %1146 = dma.done.wait [#allocation3], 128  }
 0x48e   :  { %1147 = vsyncadd [#allocation3], 4294967168 }
 0x48f   :  { %947 = vsyncpa [#allocation3], 1 }

</bundles_post_ra>
